<compile_context>
chip_gen: v5e
topology: v5e:2x2
jax: 0.10.0
libtpu: 0.0.40
codegen_flags: <defaults>
</compile_context>

<pallas_src>
import functools
import math

import jax
import jax.numpy as jnp
import numpy as np
from jax import lax
from jax.experimental import pallas as pl
from jax.experimental.pallas import tpu as pltpu


# ----------------------------- kernel ----------------------------------------


def _layernorm(x, gamma, beta, eps=1e-5):
    mu = jnp.mean(x, axis=-1, keepdims=True)
    var = jnp.mean((x - mu) ** 2, axis=-1, keepdims=True)
    return (x - mu) * lax.rsqrt(var + eps) * gamma + beta


def bpgt_fused_kernel(h_ref, pe_ref, wpe_ref, bpe_ref, mask_ref,
                      wqkvo_ref, bqkvo_ref, w1_ref, b1_ref, w2_ref, misc_ref,
                      out_ref, attn_ref, *, num_layers, d_model):
    # --- embedding: output = h + pe_proj(pe) ---
    x = (h_ref[...]
         + jnp.dot(pe_ref[...], wpe_ref[...], preferred_element_type=jnp.float32)
         + bpe_ref[...])
    mask = mask_ref[...]                      # additive prior masks (adj + spatial)
    inv_sqrt_d = 1.0 / math.sqrt(d_model)
    attn = None

    # Static unroll over layers; activation never leaves VMEM.
    for l in range(num_layers):
        wqkvo = wqkvo_ref[l]                  # (D, 4D) = wq | wk | wv | wo
        bqkvo = bqkvo_ref[l]                  # (1, 4D)

        # One lane-dense fused projection (q/k/v used; the wo column block is
        # reused below for the output projection on ctx).
        qkv = jnp.dot(x, wqkvo, preferred_element_type=jnp.float32) + bqkvo
        q = qkv[:, 0 * d_model:1 * d_model]
        k = qkv[:, 1 * d_model:2 * d_model]
        v = qkv[:, 2 * d_model:3 * d_model]

        # scores = q @ k^T without materializing a transpose.
        scores = lax.dot_general(q, k, (((1,), (1,)), ((), ())),
                                 preferred_element_type=jnp.float32) * inv_sqrt_d
        scores = scores + mask

        m = jnp.max(scores, axis=-1, keepdims=True)
        p = jnp.exp(scores - m)
        denom = jnp.sum(p, axis=-1, keepdims=True)
        attn = p * pl.reciprocal(denom, approx=True)

        ctx = jnp.dot(attn, v, preferred_element_type=jnp.float32)
        y = (jnp.dot(ctx, wqkvo[:, 3 * d_model:],
                     preferred_element_type=jnp.float32)
             + bqkvo[:, 3 * d_model:])

        misc = misc_ref[l]                    # (5, D) = b2 | g1 | be1 | g2 | be2
        b2 = misc[0:1, :]
        g1, be1 = misc[1:2, :], misc[2:3, :]
        g2, be2 = misc[3:4, :], misc[4:5, :]

        x1 = _layernorm(x + y, g1, be1)

        hdn = jnp.maximum(
            jnp.dot(x1, w1_ref[l], preferred_element_type=jnp.float32) + b1_ref[l],
            0.0)
        ffn = jnp.dot(hdn, w2_ref[l], preferred_element_type=jnp.float32) + b2
        x = _layernorm(x1 + ffn, g2, be2)

    out_ref[...] = x
    attn_ref[...] = attn                      # only the last layer's attn matters


# ----------------------------- wrapper ----------------------------------------

_VMEM = pl.BlockSpec(memory_space=pltpu.MemorySpace.VMEM)


def bpgt_forward(h, cls_token, pe_aug, wpe_t, bpe, mask_combined,
                 wqkvo, bqkvo, w1, b1, w2, misc, num_layers):
    # h: (K, D);  cls token prepended -> (S, D)
    h_cls = jnp.concatenate([cls_token, h], axis=0)
    S, D = h_cls.shape
    D_FF = w1.shape[-1]

    flops = (2 * S * pe_aug.shape[-1] * D
             + num_layers * (2 * S * D * 4 * D        # fused qkv(+o) proj
                             + 4 * S * S * D          # scores + ctx
                             + 2 * S * D * D          # out proj
                             + 4 * S * D * D_FF))     # FFN
    bytes_acc = (sum(int(np.prod(a.shape)) * 4 for a in
                     (h_cls, pe_aug, wpe_t, bpe, mask_combined,
                      wqkvo, bqkvo, w1, b1, w2, misc))
                 + (S * D + S * S) * 4)

    kernel = functools.partial(bpgt_fused_kernel,
                               num_layers=num_layers, d_model=D)
    return pl.pallas_call(
        kernel,
        out_shape=(jax.ShapeDtypeStruct((S, D), jnp.float32),
                   jax.ShapeDtypeStruct((S, S), jnp.float32)),
        in_specs=[_VMEM] * 11,
        out_specs=(_VMEM, _VMEM),
        cost_estimate=pl.CostEstimate(flops=flops,
                                      transcendentals=num_layers * S * S,
                                      bytes_accessed=bytes_acc),
    )(h_cls, pe_aug, wpe_t, bpe, mask_combined,
      wqkvo, bqkvo, w1, b1, w2, misc)


# ----------------------------- setup / main -----------------------------------


if __name__ == "__main__":
    K, N_PE, D, D_FF, NUM_LAYERS = 7, 8, 32, 64, 2
    S = K + 1
    L = NUM_LAYERS

    key = jax.random.PRNGKey(0)
    keys = jax.random.split(key, 16)

    # ---- inputs / buffers (BPGT.__init__ / positional_encoding in plain glue) ----
    h = jax.random.normal(keys[0], (K, D), jnp.float32)
    cls_token = jax.random.normal(keys[1], (1, D), jnp.float32)

    # organ positional encoding pe in R^(K, N) ; prepend a row of ones (cls token)
    pe = jax.random.normal(keys[2], (K, N_PE), jnp.float32)
    pe_aug = jnp.concatenate([jnp.ones((1, N_PE), jnp.float32), pe], axis=0)

    # pe_proj: Linear(N_PE -> D), xavier-style weight, zero bias (pre-transposed)
    wpe_t = jax.random.normal(keys[3], (N_PE, D), jnp.float32) * math.sqrt(
        2.0 / (N_PE + D))
    bpe = jnp.zeros((1, D), jnp.float32)

    # spatial mask (mutual information) in R^(K, K); sum <= K*K so no rescale
    spatial_mask = jax.random.uniform(keys[4], (K, K), jnp.float32)
    mask_scalar_proj = jax.random.uniform(keys[5], (K, K), jnp.float32)

    # adjacency: ring graph with self loops -> augmented with cls row/col,
    # then normalized Laplacian, then abs()   (mirrors positional_encoding)
    adj_np = np.zeros((K, K), np.float32)
    for i in range(K):
        adj_np[i, i] = 1.0
        adj_np[i, (i + 1) % K] = 1.0
        adj_np[(i + 1) % K, i] = 1.0
    adj_aug = np.concatenate([np.ones((1, K), np.float32), adj_np], axis=0)
    adj_aug = np.concatenate([np.ones((S, 1), np.float32), adj_aug], axis=1)
    deg = adj_aug.sum(axis=0) - 1.0
    n_inv = np.diag(np.clip(deg, 1.0, None) ** -0.5)
    lap = np.eye(S, dtype=np.float32) - n_inv @ adj_aug @ n_inv
    adj_final = jnp.asarray(np.abs(lap), jnp.float32)
    adj_scalar_proj = jax.random.uniform(keys[6], (S, S), jnp.float32)

    # combined additive attention bias (tgt_mask list summed); the K x K spatial
    # term is zero-padded for the cls row/col.
    # TODO(synk): the real decoder_layer is external to BPGT; this follows the
    # standard additive-bias interpretation of its tgt_mask list.
    adj_term = adj_scalar_proj * adj_final
    sp_term = jnp.zeros((S, S), jnp.float32).at[1:, 1:].set(
        mask_scalar_proj * spatial_mask)
    mask_combined = adj_term + sp_term

    # ---- per-layer (stacked) weights: clones() deep-copies => distinct weights ----
    sc = 1.0 / math.sqrt(D)
    wq = jax.random.normal(keys[7], (L, D, D), jnp.float32) * sc
    wk = jax.random.normal(keys[8], (L, D, D), jnp.float32) * sc
    wv = jax.random.normal(keys[9], (L, D, D), jnp.float32) * sc
    wo = jax.random.normal(keys[10], (L, D, D), jnp.float32) * sc
    wqkvo = jnp.concatenate([wq, wk, wv, wo], axis=-1)          # (L, D, 4D)
    bqkvo = jnp.zeros((L, 1, 4 * D), jnp.float32)               # bq|bk|bv|bo

    w1 = jax.random.normal(keys[11], (L, D, D_FF), jnp.float32) * sc
    b1 = jnp.zeros((L, 1, D_FF), jnp.float32)
    w2 = jax.random.normal(keys[12], (L, D_FF, D), jnp.float32) * (
        1.0 / math.sqrt(D_FF))

    b2 = jnp.zeros((L, 1, D), jnp.float32)
    g1 = jnp.ones((L, 1, D), jnp.float32)
    be1 = jnp.zeros((L, 1, D), jnp.float32)
    g2 = jnp.ones((L, 1, D), jnp.float32)
    be2 = jnp.zeros((L, 1, D), jnp.float32)
    misc = jnp.concatenate([b2, g1, be1, g2, be2], axis=1)      # (L, 5, D)

    fwd = jax.jit(bpgt_forward, static_argnums=(12,))
    output, attn = fwd(h, cls_token, pe_aug, wpe_t, bpe, mask_combined,
                       wqkvo, bqkvo, w1, b1, w2, misc, NUM_LAYERS)
    output = jax.block_until_ready(output)
    attn = jax.block_until_ready(attn)

    assert output.shape == (S, D) and attn.shape == (S, S)
    assert bool(jnp.all(jnp.isfinite(output))) and bool(jnp.all(jnp.isfinite(attn)))
    print("KERNEL_OK")
</pallas_src>

<mosaic_0001>
module attributes {stable_mosaic.version = 11 : i64} {
  func.func @bpgt_fused_kernel(%arg0: memref<8x32xf32, #tpu.memory_space<vmem>>, %arg1: memref<8x8xf32, #tpu.memory_space<vmem>>, %arg2: memref<8x32xf32, #tpu.memory_space<vmem>>, %arg3: memref<1x32xf32, #tpu.memory_space<vmem>>, %arg4: memref<8x8xf32, #tpu.memory_space<vmem>>, %arg5: memref<2x32x128xf32, #tpu.memory_space<vmem>>, %arg6: memref<2x1x128xf32, #tpu.memory_space<vmem>>, %arg7: memref<2x32x64xf32, #tpu.memory_space<vmem>>, %arg8: memref<2x1x64xf32, #tpu.memory_space<vmem>>, %arg9: memref<2x64x32xf32, #tpu.memory_space<vmem>>, %arg10: memref<2x5x32xf32, #tpu.memory_space<vmem>>, %arg11: memref<8x32xf32, #tpu.memory_space<vmem>>, %arg12: memref<8x8xf32, #tpu.memory_space<vmem>>) attributes {dimension_semantics = [], scalar_prefetch = 0 : i64, scratch_operands = 0 : i64, tpu.core_type = #tpu.core_type<tc>} {
    %c0 = arith.constant 0 : index
    %c0_0 = arith.constant 0 : index
    %0 = vector.load %arg0[%c0, %c0_0] : memref<8x32xf32, #tpu.memory_space<vmem>>, vector<8x32xf32>
    %c0_1 = arith.constant 0 : index
    %c0_2 = arith.constant 0 : index
    %1 = vector.load %arg1[%c0_1, %c0_2] : memref<8x8xf32, #tpu.memory_space<vmem>>, vector<8x8xf32>
    %c0_3 = arith.constant 0 : index
    %c0_4 = arith.constant 0 : index
    %2 = vector.load %arg2[%c0_3, %c0_4] : memref<8x32xf32, #tpu.memory_space<vmem>>, vector<8x32xf32>
    %cst = arith.constant dense<0.000000e+00> : vector<8x32xf32>
    %3 = tpu.matmul %1, %2, %cst {dimension_numbers = #tpu.dot_dimension_numbers<[1], [0], [0], [1], [0, 0, 1, 1], [], []>} : vector<8x8xf32>, vector<8x32xf32>, vector<8x32xf32> -> vector<8x32xf32>
    %4 = arith.addf %0, %3 : vector<8x32xf32>
    %c0_5 = arith.constant 0 : index
    %c0_6 = arith.constant 0 : index
    %5 = vector.load %arg3[%c0_5, %c0_6] : memref<1x32xf32, #tpu.memory_space<vmem>>, vector<1x32xf32>
    %6 = vector.broadcast %5 : vector<1x32xf32> to vector<8x32xf32>
    %7 = arith.addf %4, %6 : vector<8x32xf32>
    %c0_7 = arith.constant 0 : index
    %c0_8 = arith.constant 0 : index
    %8 = vector.load %arg4[%c0_7, %c0_8] : memref<8x8xf32, #tpu.memory_space<vmem>>, vector<8x8xf32>
    %c0_9 = arith.constant 0 : index
    %c0_10 = arith.constant 0 : index
    %c0_11 = arith.constant 0 : index
    %9 = vector.load %arg5[%c0_9, %c0_10, %c0_11] : memref<2x32x128xf32, #tpu.memory_space<vmem>>, vector<1x32x128xf32>
    %10 = vector.shape_cast %9 : vector<1x32x128xf32> to vector<32x128xf32>
    %c0_12 = arith.constant 0 : index
    %c0_13 = arith.constant 0 : index
    %c0_14 = arith.constant 0 : index
    %11 = vector.load %arg6[%c0_12, %c0_13, %c0_14] : memref<2x1x128xf32, #tpu.memory_space<vmem>>, vector<1x1x128xf32>
    %12 = vector.shape_cast %11 : vector<1x1x128xf32> to vector<1x128xf32>
    %cst_15 = arith.constant dense<0.000000e+00> : vector<8x128xf32>
    %13 = tpu.matmul %7, %10, %cst_15 {dimension_numbers = #tpu.dot_dimension_numbers<[1], [0], [0], [1], [0, 0, 1, 1], [], []>} : vector<8x32xf32>, vector<32x128xf32>, vector<8x128xf32> -> vector<8x128xf32>
    %14 = vector.broadcast %12 : vector<1x128xf32> to vector<8x128xf32>
    %15 = arith.addf %13, %14 : vector<8x128xf32>
    %16 = vector.extract_strided_slice %15 {offsets = [0, 0], sizes = [8, 32], strides = [1, 1]} : vector<8x128xf32> to vector<8x32xf32>
    %17 = vector.extract_strided_slice %15 {offsets = [0, 32], sizes = [8, 32], strides = [1, 1]} : vector<8x128xf32> to vector<8x32xf32>
    %18 = vector.extract_strided_slice %15 {offsets = [0, 64], sizes = [8, 32], strides = [1, 1]} : vector<8x128xf32> to vector<8x32xf32>
    %cst_16 = arith.constant dense<0.000000e+00> : vector<8x8xf32>
    %19 = tpu.matmul %16, %17, %cst_16 {dimension_numbers = #tpu.dot_dimension_numbers<[1], [1], [0], [0], [0, 0, 1, 0], [], []>} : vector<8x32xf32>, vector<8x32xf32>, vector<8x8xf32> -> vector<8x8xf32>
    %cst_17 = arith.constant 0.176776692 : f32
    %20 = vector.broadcast %cst_17 : f32 to vector<8x8xf32>
    %21 = arith.mulf %19, %20 : vector<8x8xf32>
    %22 = arith.addf %21, %8 : vector<8x8xf32>
    %cst_18 = arith.constant dense<0xFF800000> : vector<8xf32>
    %23 = vector.multi_reduction <maximumf>, %22, %cst_18 [1] : vector<8x8xf32> to vector<8xf32>
    %24 = vector.shape_cast %23 : vector<8xf32> to vector<8x1xf32>
    %25 = vector.broadcast %24 : vector<8x1xf32> to vector<8x8xf32>
    %26 = arith.subf %22, %25 : vector<8x8xf32>
    %27 = math.exp %26 : vector<8x8xf32>
    %cst_19 = arith.constant dense<0.000000e+00> : vector<8xf32>
    %28 = vector.multi_reduction <add>, %27, %cst_19 [1] : vector<8x8xf32> to vector<8xf32>
    %29 = vector.shape_cast %28 : vector<8xf32> to vector<8x1xf32>
    %30 = tpu.reciprocal %29 {approx = true} : vector<8x1xf32> -> vector<8x1xf32>
    %31 = vector.broadcast %30 : vector<8x1xf32> to vector<8x8xf32>
    %32 = arith.mulf %27, %31 : vector<8x8xf32>
    %cst_20 = arith.constant dense<0.000000e+00> : vector<8x32xf32>
    %33 = tpu.matmul %32, %18, %cst_20 {dimension_numbers = #tpu.dot_dimension_numbers<[1], [0], [0], [1], [0, 0, 1, 1], [], []>} : vector<8x8xf32>, vector<8x32xf32>, vector<8x32xf32> -> vector<8x32xf32>
    %34 = vector.extract_strided_slice %10 {offsets = [0, 96], sizes = [32, 32], strides = [1, 1]} : vector<32x128xf32> to vector<32x32xf32>
    %cst_21 = arith.constant dense<0.000000e+00> : vector<8x32xf32>
    %35 = tpu.matmul %33, %34, %cst_21 {dimension_numbers = #tpu.dot_dimension_numbers<[1], [0], [0], [1], [0, 0, 1, 1], [], []>} : vector<8x32xf32>, vector<32x32xf32>, vector<8x32xf32> -> vector<8x32xf32>
    %36 = vector.extract_strided_slice %12 {offsets = [0, 96], sizes = [1, 32], strides = [1, 1]} : vector<1x128xf32> to vector<1x32xf32>
    %37 = vector.broadcast %36 : vector<1x32xf32> to vector<8x32xf32>
    %38 = arith.addf %35, %37 : vector<8x32xf32>
    %c0_22 = arith.constant 0 : index
    %c0_23 = arith.constant 0 : index
    %c0_24 = arith.constant 0 : index
    %39 = vector.load %arg10[%c0_22, %c0_23, %c0_24] : memref<2x5x32xf32, #tpu.memory_space<vmem>>, vector<1x5x32xf32>
    %40 = vector.shape_cast %39 : vector<1x5x32xf32> to vector<5x32xf32>
    %41 = vector.extract_strided_slice %40 {offsets = [0, 0], sizes = [1, 32], strides = [1, 1]} : vector<5x32xf32> to vector<1x32xf32>
    %42 = vector.extract_strided_slice %40 {offsets = [1, 0], sizes = [1, 32], strides = [1, 1]} : vector<5x32xf32> to vector<1x32xf32>
    %43 = vector.extract_strided_slice %40 {offsets = [2, 0], sizes = [1, 32], strides = [1, 1]} : vector<5x32xf32> to vector<1x32xf32>
    %44 = vector.extract_strided_slice %40 {offsets = [3, 0], sizes = [1, 32], strides = [1, 1]} : vector<5x32xf32> to vector<1x32xf32>
    %45 = vector.extract_strided_slice %40 {offsets = [4, 0], sizes = [1, 32], strides = [1, 1]} : vector<5x32xf32> to vector<1x32xf32>
    %46 = arith.addf %7, %38 : vector<8x32xf32>
    %cst_25 = arith.constant dense<0.000000e+00> : vector<8xf32>
    %47 = vector.multi_reduction <add>, %46, %cst_25 [1] : vector<8x32xf32> to vector<8xf32>
    %48 = vector.shape_cast %47 : vector<8xf32> to vector<8x1xf32>
    %cst_26 = arith.constant 3.200000e+01 : f32
    %49 = vector.broadcast %cst_26 : f32 to vector<8x1xf32>
    %50 = arith.divf %48, %49 : vector<8x1xf32>
    %51 = vector.broadcast %50 : vector<8x1xf32> to vector<8x32xf32>
    %52 = arith.subf %46, %51 : vector<8x32xf32>
    %53 = arith.mulf %52, %52 : vector<8x32xf32>
    %cst_27 = arith.constant dense<0.000000e+00> : vector<8xf32>
    %54 = vector.multi_reduction <add>, %53, %cst_27 [1] : vector<8x32xf32> to vector<8xf32>
    %55 = vector.shape_cast %54 : vector<8xf32> to vector<8x1xf32>
    %cst_28 = arith.constant 3.200000e+01 : f32
    %56 = vector.broadcast %cst_28 : f32 to vector<8x1xf32>
    %57 = arith.divf %55, %56 : vector<8x1xf32>
    %58 = vector.broadcast %50 : vector<8x1xf32> to vector<8x32xf32>
    %59 = arith.subf %46, %58 : vector<8x32xf32>
    %cst_29 = arith.constant 9.99999974E-6 : f32
    %60 = vector.broadcast %cst_29 : f32 to vector<8x1xf32>
    %61 = arith.addf %57, %60 : vector<8x1xf32>
    %62 = math.rsqrt %61 : vector<8x1xf32>
    %63 = vector.broadcast %62 : vector<8x1xf32> to vector<8x32xf32>
    %64 = arith.mulf %59, %63 : vector<8x32xf32>
    %65 = vector.broadcast %42 : vector<1x32xf32> to vector<8x32xf32>
    %66 = arith.mulf %64, %65 : vector<8x32xf32>
    %67 = vector.broadcast %43 : vector<1x32xf32> to vector<8x32xf32>
    %68 = arith.addf %66, %67 : vector<8x32xf32>
    %c0_30 = arith.constant 0 : index
    %c0_31 = arith.constant 0 : index
    %c0_32 = arith.constant 0 : index
    %69 = vector.load %arg7[%c0_30, %c0_31, %c0_32] : memref<2x32x64xf32, #tpu.memory_space<vmem>>, vector<1x32x64xf32>
    %70 = vector.shape_cast %69 : vector<1x32x64xf32> to vector<32x64xf32>
    %cst_33 = arith.constant dense<0.000000e+00> : vector<8x64xf32>
    %71 = tpu.matmul %68, %70, %cst_33 {dimension_numbers = #tpu.dot_dimension_numbers<[1], [0], [0], [1], [0, 0, 1, 1], [], []>} : vector<8x32xf32>, vector<32x64xf32>, vector<8x64xf32> -> vector<8x64xf32>
    %c0_34 = arith.constant 0 : index
    %c0_35 = arith.constant 0 : index
    %c0_36 = arith.constant 0 : index
    %72 = vector.load %arg8[%c0_34, %c0_35, %c0_36] : memref<2x1x64xf32, #tpu.memory_space<vmem>>, vector<1x1x64xf32>
    %73 = vector.shape_cast %72 : vector<1x1x64xf32> to vector<1x64xf32>
    %74 = vector.broadcast %73 : vector<1x64xf32> to vector<8x64xf32>
    %75 = arith.addf %71, %74 : vector<8x64xf32>
    %cst_37 = arith.constant 0.000000e+00 : f32
    %76 = vector.broadcast %cst_37 : f32 to vector<8x64xf32>
    %77 = arith.maximumf %75, %76 : vector<8x64xf32>
    %c0_38 = arith.constant 0 : index
    %c0_39 = arith.constant 0 : index
    %c0_40 = arith.constant 0 : index
    %78 = vector.load %arg9[%c0_38, %c0_39, %c0_40] : memref<2x64x32xf32, #tpu.memory_space<vmem>>, vector<1x64x32xf32>
    %79 = vector.shape_cast %78 : vector<1x64x32xf32> to vector<64x32xf32>
    %cst_41 = arith.constant dense<0.000000e+00> : vector<8x32xf32>
    %80 = tpu.matmul %77, %79, %cst_41 {dimension_numbers = #tpu.dot_dimension_numbers<[1], [0], [0], [1], [0, 0, 1, 1], [], []>} : vector<8x64xf32>, vector<64x32xf32>, vector<8x32xf32> -> vector<8x32xf32>
    %81 = vector.broadcast %41 : vector<1x32xf32> to vector<8x32xf32>
    %82 = arith.addf %80, %81 : vector<8x32xf32>
    %83 = arith.addf %68, %82 : vector<8x32xf32>
    %cst_42 = arith.constant dense<0.000000e+00> : vector<8xf32>
    %84 = vector.multi_reduction <add>, %83, %cst_42 [1] : vector<8x32xf32> to vector<8xf32>
    %85 = vector.shape_cast %84 : vector<8xf32> to vector<8x1xf32>
    %cst_43 = arith.constant 3.200000e+01 : f32
    %86 = vector.broadcast %cst_43 : f32 to vector<8x1xf32>
    %87 = arith.divf %85, %86 : vector<8x1xf32>
    %88 = vector.broadcast %87 : vector<8x1xf32> to vector<8x32xf32>
    %89 = arith.subf %83, %88 : vector<8x32xf32>
    %90 = arith.mulf %89, %89 : vector<8x32xf32>
    %cst_44 = arith.constant dense<0.000000e+00> : vector<8xf32>
    %91 = vector.multi_reduction <add>, %90, %cst_44 [1] : vector<8x32xf32> to vector<8xf32>
    %92 = vector.shape_cast %91 : vector<8xf32> to vector<8x1xf32>
    %cst_45 = arith.constant 3.200000e+01 : f32
    %93 = vector.broadcast %cst_45 : f32 to vector<8x1xf32>
    %94 = arith.divf %92, %93 : vector<8x1xf32>
    %95 = vector.broadcast %87 : vector<8x1xf32> to vector<8x32xf32>
    %96 = arith.subf %83, %95 : vector<8x32xf32>
    %cst_46 = arith.constant 9.99999974E-6 : f32
    %97 = vector.broadcast %cst_46 : f32 to vector<8x1xf32>
    %98 = arith.addf %94, %97 : vector<8x1xf32>
    %99 = math.rsqrt %98 : vector<8x1xf32>
    %100 = vector.broadcast %99 : vector<8x1xf32> to vector<8x32xf32>
    %101 = arith.mulf %96, %100 : vector<8x32xf32>
    %102 = vector.broadcast %44 : vector<1x32xf32> to vector<8x32xf32>
    %103 = arith.mulf %101, %102 : vector<8x32xf32>
    %104 = vector.broadcast %45 : vector<1x32xf32> to vector<8x32xf32>
    %105 = arith.addf %103, %104 : vector<8x32xf32>
    %c1 = arith.constant 1 : index
    %c0_47 = arith.constant 0 : index
    %c0_48 = arith.constant 0 : index
    %106 = vector.load %arg5[%c1, %c0_47, %c0_48] : memref<2x32x128xf32, #tpu.memory_space<vmem>>, vector<1x32x128xf32>
    %107 = vector.shape_cast %106 : vector<1x32x128xf32> to vector<32x128xf32>
    %c1_49 = arith.constant 1 : index
    %c0_50 = arith.constant 0 : index
    %c0_51 = arith.constant 0 : index
    %108 = vector.load %arg6[%c1_49, %c0_50, %c0_51] : memref<2x1x128xf32, #tpu.memory_space<vmem>>, vector<1x1x128xf32>
    %109 = vector.shape_cast %108 : vector<1x1x128xf32> to vector<1x128xf32>
    %cst_52 = arith.constant dense<0.000000e+00> : vector<8x128xf32>
    %110 = tpu.matmul %105, %107, %cst_52 {dimension_numbers = #tpu.dot_dimension_numbers<[1], [0], [0], [1], [0, 0, 1, 1], [], []>} : vector<8x32xf32>, vector<32x128xf32>, vector<8x128xf32> -> vector<8x128xf32>
    %111 = vector.broadcast %109 : vector<1x128xf32> to vector<8x128xf32>
    %112 = arith.addf %110, %111 : vector<8x128xf32>
    %113 = vector.extract_strided_slice %112 {offsets = [0, 0], sizes = [8, 32], strides = [1, 1]} : vector<8x128xf32> to vector<8x32xf32>
    %114 = vector.extract_strided_slice %112 {offsets = [0, 32], sizes = [8, 32], strides = [1, 1]} : vector<8x128xf32> to vector<8x32xf32>
    %115 = vector.extract_strided_slice %112 {offsets = [0, 64], sizes = [8, 32], strides = [1, 1]} : vector<8x128xf32> to vector<8x32xf32>
    %cst_53 = arith.constant dense<0.000000e+00> : vector<8x8xf32>
    %116 = tpu.matmul %113, %114, %cst_53 {dimension_numbers = #tpu.dot_dimension_numbers<[1], [1], [0], [0], [0, 0, 1, 0], [], []>} : vector<8x32xf32>, vector<8x32xf32>, vector<8x8xf32> -> vector<8x8xf32>
    %cst_54 = arith.constant 0.176776692 : f32
    %117 = vector.broadcast %cst_54 : f32 to vector<8x8xf32>
    %118 = arith.mulf %116, %117 : vector<8x8xf32>
    %119 = arith.addf %118, %8 : vector<8x8xf32>
    %cst_55 = arith.constant dense<0xFF800000> : vector<8xf32>
    %120 = vector.multi_reduction <maximumf>, %119, %cst_55 [1] : vector<8x8xf32> to vector<8xf32>
    %121 = vector.shape_cast %120 : vector<8xf32> to vector<8x1xf32>
    %122 = vector.broadcast %121 : vector<8x1xf32> to vector<8x8xf32>
    %123 = arith.subf %119, %122 : vector<8x8xf32>
    %124 = math.exp %123 : vector<8x8xf32>
    %cst_56 = arith.constant dense<0.000000e+00> : vector<8xf32>
    %125 = vector.multi_reduction <add>, %124, %cst_56 [1] : vector<8x8xf32> to vector<8xf32>
    %126 = vector.shape_cast %125 : vector<8xf32> to vector<8x1xf32>
    %127 = tpu.reciprocal %126 {approx = true} : vector<8x1xf32> -> vector<8x1xf32>
    %128 = vector.broadcast %127 : vector<8x1xf32> to vector<8x8xf32>
    %129 = arith.mulf %124, %128 : vector<8x8xf32>
    %cst_57 = arith.constant dense<0.000000e+00> : vector<8x32xf32>
    %130 = tpu.matmul %129, %115, %cst_57 {dimension_numbers = #tpu.dot_dimension_numbers<[1], [0], [0], [1], [0, 0, 1, 1], [], []>} : vector<8x8xf32>, vector<8x32xf32>, vector<8x32xf32> -> vector<8x32xf32>
    %131 = vector.extract_strided_slice %107 {offsets = [0, 96], sizes = [32, 32], strides = [1, 1]} : vector<32x128xf32> to vector<32x32xf32>
    %cst_58 = arith.constant dense<0.000000e+00> : vector<8x32xf32>
    %132 = tpu.matmul %130, %131, %cst_58 {dimension_numbers = #tpu.dot_dimension_numbers<[1], [0], [0], [1], [0, 0, 1, 1], [], []>} : vector<8x32xf32>, vector<32x32xf32>, vector<8x32xf32> -> vector<8x32xf32>
    %133 = vector.extract_strided_slice %109 {offsets = [0, 96], sizes = [1, 32], strides = [1, 1]} : vector<1x128xf32> to vector<1x32xf32>
    %134 = vector.broadcast %133 : vector<1x32xf32> to vector<8x32xf32>
    %135 = arith.addf %132, %134 : vector<8x32xf32>
    %c1_59 = arith.constant 1 : index
    %c0_60 = arith.constant 0 : index
    %c0_61 = arith.constant 0 : index
    %136 = vector.load %arg10[%c1_59, %c0_60, %c0_61] : memref<2x5x32xf32, #tpu.memory_space<vmem>>, vector<1x5x32xf32>
    %137 = vector.shape_cast %136 : vector<1x5x32xf32> to vector<5x32xf32>
    %138 = vector.extract_strided_slice %137 {offsets = [0, 0], sizes = [1, 32], strides = [1, 1]} : vector<5x32xf32> to vector<1x32xf32>
    %139 = vector.extract_strided_slice %137 {offsets = [1, 0], sizes = [1, 32], strides = [1, 1]} : vector<5x32xf32> to vector<1x32xf32>
    %140 = vector.extract_strided_slice %137 {offsets = [2, 0], sizes = [1, 32], strides = [1, 1]} : vector<5x32xf32> to vector<1x32xf32>
    %141 = vector.extract_strided_slice %137 {offsets = [3, 0], sizes = [1, 32], strides = [1, 1]} : vector<5x32xf32> to vector<1x32xf32>
    %142 = vector.extract_strided_slice %137 {offsets = [4, 0], sizes = [1, 32], strides = [1, 1]} : vector<5x32xf32> to vector<1x32xf32>
    %143 = arith.addf %105, %135 : vector<8x32xf32>
    %cst_62 = arith.constant dense<0.000000e+00> : vector<8xf32>
    %144 = vector.multi_reduction <add>, %143, %cst_62 [1] : vector<8x32xf32> to vector<8xf32>
    %145 = vector.shape_cast %144 : vector<8xf32> to vector<8x1xf32>
    %cst_63 = arith.constant 3.200000e+01 : f32
    %146 = vector.broadcast %cst_63 : f32 to vector<8x1xf32>
    %147 = arith.divf %145, %146 : vector<8x1xf32>
    %148 = vector.broadcast %147 : vector<8x1xf32> to vector<8x32xf32>
    %149 = arith.subf %143, %148 : vector<8x32xf32>
    %150 = arith.mulf %149, %149 : vector<8x32xf32>
    %cst_64 = arith.constant dense<0.000000e+00> : vector<8xf32>
    %151 = vector.multi_reduction <add>, %150, %cst_64 [1] : vector<8x32xf32> to vector<8xf32>
    %152 = vector.shape_cast %151 : vector<8xf32> to vector<8x1xf32>
    %cst_65 = arith.constant 3.200000e+01 : f32
    %153 = vector.broadcast %cst_65 : f32 to vector<8x1xf32>
    %154 = arith.divf %152, %153 : vector<8x1xf32>
    %155 = vector.broadcast %147 : vector<8x1xf32> to vector<8x32xf32>
    %156 = arith.subf %143, %155 : vector<8x32xf32>
    %cst_66 = arith.constant 9.99999974E-6 : f32
    %157 = vector.broadcast %cst_66 : f32 to vector<8x1xf32>
    %158 = arith.addf %154, %157 : vector<8x1xf32>
    %159 = math.rsqrt %158 : vector<8x1xf32>
    %160 = vector.broadcast %159 : vector<8x1xf32> to vector<8x32xf32>
    %161 = arith.mulf %156, %160 : vector<8x32xf32>
    %162 = vector.broadcast %139 : vector<1x32xf32> to vector<8x32xf32>
    %163 = arith.mulf %161, %162 : vector<8x32xf32>
    %164 = vector.broadcast %140 : vector<1x32xf32> to vector<8x32xf32>
    %165 = arith.addf %163, %164 : vector<8x32xf32>
    %c1_67 = arith.constant 1 : index
    %c0_68 = arith.constant 0 : index
    %c0_69 = arith.constant 0 : index
    %166 = vector.load %arg7[%c1_67, %c0_68, %c0_69] : memref<2x32x64xf32, #tpu.memory_space<vmem>>, vector<1x32x64xf32>
    %167 = vector.shape_cast %166 : vector<1x32x64xf32> to vector<32x64xf32>
    %cst_70 = arith.constant dense<0.000000e+00> : vector<8x64xf32>
    %168 = tpu.matmul %165, %167, %cst_70 {dimension_numbers = #tpu.dot_dimension_numbers<[1], [0], [0], [1], [0, 0, 1, 1], [], []>} : vector<8x32xf32>, vector<32x64xf32>, vector<8x64xf32> -> vector<8x64xf32>
    %c1_71 = arith.constant 1 : index
    %c0_72 = arith.constant 0 : index
    %c0_73 = arith.constant 0 : index
    %169 = vector.load %arg8[%c1_71, %c0_72, %c0_73] : memref<2x1x64xf32, #tpu.memory_space<vmem>>, vector<1x1x64xf32>
    %170 = vector.shape_cast %169 : vector<1x1x64xf32> to vector<1x64xf32>
    %171 = vector.broadcast %170 : vector<1x64xf32> to vector<8x64xf32>
    %172 = arith.addf %168, %171 : vector<8x64xf32>
    %cst_74 = arith.constant 0.000000e+00 : f32
    %173 = vector.broadcast %cst_74 : f32 to vector<8x64xf32>
    %174 = arith.maximumf %172, %173 : vector<8x64xf32>
    %c1_75 = arith.constant 1 : index
    %c0_76 = arith.constant 0 : index
    %c0_77 = arith.constant 0 : index
    %175 = vector.load %arg9[%c1_75, %c0_76, %c0_77] : memref<2x64x32xf32, #tpu.memory_space<vmem>>, vector<1x64x32xf32>
    %176 = vector.shape_cast %175 : vector<1x64x32xf32> to vector<64x32xf32>
    %cst_78 = arith.constant dense<0.000000e+00> : vector<8x32xf32>
    %177 = tpu.matmul %174, %176, %cst_78 {dimension_numbers = #tpu.dot_dimension_numbers<[1], [0], [0], [1], [0, 0, 1, 1], [], []>} : vector<8x64xf32>, vector<64x32xf32>, vector<8x32xf32> -> vector<8x32xf32>
    %178 = vector.broadcast %138 : vector<1x32xf32> to vector<8x32xf32>
    %179 = arith.addf %177, %178 : vector<8x32xf32>
    %180 = arith.addf %165, %179 : vector<8x32xf32>
    %cst_79 = arith.constant dense<0.000000e+00> : vector<8xf32>
    %181 = vector.multi_reduction <add>, %180, %cst_79 [1] : vector<8x32xf32> to vector<8xf32>
    %182 = vector.shape_cast %181 : vector<8xf32> to vector<8x1xf32>
    %cst_80 = arith.constant 3.200000e+01 : f32
    %183 = vector.broadcast %cst_80 : f32 to vector<8x1xf32>
    %184 = arith.divf %182, %183 : vector<8x1xf32>
    %185 = vector.broadcast %184 : vector<8x1xf32> to vector<8x32xf32>
    %186 = arith.subf %180, %185 : vector<8x32xf32>
    %187 = arith.mulf %186, %186 : vector<8x32xf32>
    %cst_81 = arith.constant dense<0.000000e+00> : vector<8xf32>
    %188 = vector.multi_reduction <add>, %187, %cst_81 [1] : vector<8x32xf32> to vector<8xf32>
    %189 = vector.shape_cast %188 : vector<8xf32> to vector<8x1xf32>
    %cst_82 = arith.constant 3.200000e+01 : f32
    %190 = vector.broadcast %cst_82 : f32 to vector<8x1xf32>
    %191 = arith.divf %189, %190 : vector<8x1xf32>
    %192 = vector.broadcast %184 : vector<8x1xf32> to vector<8x32xf32>
    %193 = arith.subf %180, %192 : vector<8x32xf32>
    %cst_83 = arith.constant 9.99999974E-6 : f32
    %194 = vector.broadcast %cst_83 : f32 to vector<8x1xf32>
    %195 = arith.addf %191, %194 : vector<8x1xf32>
    %196 = math.rsqrt %195 : vector<8x1xf32>
    %197 = vector.broadcast %196 : vector<8x1xf32> to vector<8x32xf32>
    %198 = arith.mulf %193, %197 : vector<8x32xf32>
    %199 = vector.broadcast %141 : vector<1x32xf32> to vector<8x32xf32>
    %200 = arith.mulf %198, %199 : vector<8x32xf32>
    %201 = vector.broadcast %142 : vector<1x32xf32> to vector<8x32xf32>
    %202 = arith.addf %200, %201 : vector<8x32xf32>
    %c0_84 = arith.constant 0 : index
    %c0_85 = arith.constant 0 : index
    %203 = vector.load %arg11[%c0_84, %c0_85] : memref<8x32xf32, #tpu.memory_space<vmem>>, vector<8x32xf32>
    tpu.vector_store %arg11[%c0_84, %c0_85], %202 {strides = array<i32>} : memref<8x32xf32, #tpu.memory_space<vmem>>, vector<8x32xf32>,
    %c0_86 = arith.constant 0 : index
    %c0_87 = arith.constant 0 : index
    %204 = vector.load %arg12[%c0_86, %c0_87] : memref<8x8xf32, #tpu.memory_space<vmem>>, vector<8x8xf32>
    tpu.vector_store %arg12[%c0_86, %c0_87], %129 {strides = array<i32>} : memref<8x8xf32, #tpu.memory_space<vmem>>, vector<8x8xf32>,
    return
  }
}

</mosaic_0001>

<bundles_post_ra>
// kernel: bpgt_forward.1
= control target key start
LH: loop header
LB: loop body
LE: loop exit
PB: predicated region body
PF: predicated region fallthrough
CT: control target
= control target key end

     0   :  { %18 = vsyncpa [#allocation3], 0  ;;  %vm45_vm0 = vcmask 64512   ;;  %s1049_s0 = inlined_call_operand.vmem [shape: f32[8,32], index: 0, kind: input, shape index: {}]   ;;  %s1050_s1 = inlined_call_operand.vmem [shape: f32[8,8], index: 1, kind: input, shape index: {}]   ;;  %s1051_s2 = inlined_call_operand.vmem [shape: f32[8,32], index: 2, kind: input, shape index: {}]   ;;  %s1052_s3 = inlined_call_operand.vmem [shape: f32[1,32], index: 3, kind: input, shape index: {}]   ;;  %s1053_s4 = inlined_call_operand.vmem [shape: f32[8,8], index: 4, kind: input, shape index: {}]   ;;  %s1054_s5 = inlined_call_operand.vmem [shape: f32[2,32,128], index: 5, kind: input, shape index: {}]   ;;  %s1055_s6 = inlined_call_operand.vmem [shape: f32[2,1,128], index: 6, kind: input, shape index: {}]   ;;  %s1056_s7 = inlined_call_operand.vmem [shape: f32[2,32,64], index: 7, kind: input, shape index: {}]   ;;  %s1057_s8 = inlined_call_operand.vmem [shape: f32[2,1,64], index: 8, kind: input, shape index: {}]   ;;  %s1058_s9 = inlined_call_operand.vmem [shape: f32[2,64,32], index: 9, kind: input, shape index: {}]   ;;  %s1059_s10 = inlined_call_operand.vmem [shape: f32[2,5,32], index: 10, kind: input, shape index: {}]   ;;  %s1060_s11 = inlined_call_operand.hbm [shape: f32[8,32], index: 11, kind: output, shape index: {0}]   ;;  %s1061_s12 = inlined_call_operand.hbm [shape: f32[8,8], index: 12, kind: output, shape index: {1}]  }
   0x1   :  { %v44_v0 = vld [vmem:[%s1051_s2] sm:$0xff]  ;;  %v79_v2 = vld [vmem:[%s1054_s5 + $0x18] sm:$0xff] }
   0x2   :  { %v43_v1 = vld [vmem:[%s1050_s1] sm:$0xff]  ;;  %64 = vmatpush.msra.mxu0 %v44_v0  ;;  %100 = vmatpush.msra.mxu1 %v79_v2 }
   0x3   :  { %641 = vmatmul.msk.f32.vlgmr.msra.gmra.mxu0 %vm45_vm0, %v43_v1 }
   0x4   :  { %19 = vsyncpa [#allocation5], 0  ;;  %v78_v3 = vld [vmem:[%s1054_s5 + $0x10] sm:$0xff]  ;;  %v77_v4 = vld [vmem:[%s1054_s5 + $0x8] sm:$0xff]  ;;  %vm84_vm1 = vcmask 261120   ;;  %s776_s19 = smov 96  }
   0x5   :  { %101 = vmatpush.msra.mxu1 %v78_v3  ;;  %v76_v5 = vld [vmem:[%s1054_s5] sm:$0xff]  ;;  %s777_s20 = smov 64   ;;  %v681_v26 = vpack.i.bf16 %v78_v3, %v79_v2  ;;  %v779_v43 = vmov 32.0   ;;  %v254_v55 = vld [vmem:[%s1056_s7 + $0x18] sm:$0xff]  ;;  %v253_v56 = vld [vmem:[%s1056_s7 + $0x10] sm:$0xff]  ;;  %vm292_vm6 = vcmask 523264  }
   0x6   :  { %v686_v6 = vpack.i.bf16 %v76_v5, %v77_v4  ;;  %v42_v7 = vld [vmem:[%s1049_s0] sm:$0xff]  ;;  %v252_v57 = vld [vmem:[%s1056_s7 + $0x8] sm:$0xff]  ;;  %v290_v59 = vld [vmem:[%s1058_s9 + $0x38] sm:$0xff]  ;;  %s616_s21 = sshll.u32 %s1060_s11, 4  ;;  %s617_s21 = int_to_ptr.hbm [resolvable:$true] %s616_s21 }
   0x7   :  { %102 = vmatpush.msra.mxu1 %v77_v4  ;;  %v701_v8 = vld [vmem:[%s1052_s3] ss:$0 sm:$0xff]  ;;  %v289_v60 = vld [vmem:[%s1058_s9 + $0x30] sm:$0xff]  ;;  %v288_v61 = vld [vmem:[%s1058_s9 + $0x28] sm:$0xff] }
   0x8   :  { %v702_v12 = vld [vmem:[%s1055_s6] ss:$0 sm:$0xff]  ;;  %v286_v2 = vld [vmem:[%s1058_s9 + $0x18] sm:$0xff] }
   0x9   :  { %103 = vmatpush.msra.mxu1 %v76_v5  ;;  %v882_v17 = vld [vmem:[%s1053_s4] sm:$0xff]  ;;  %s778_s4 = smov 32  }
   0xa   :  { %682 = vrot.lane.b32.xlu2 %v681_v26, %s778_s4  ;;  %v251_v58 = vld [vmem:[%s1056_s7] sm:$0xff] }
   0xb   :  { %v287_v0 = vld [vmem:[%s1058_s9 + $0x20] sm:$0xff] }
  0x12   :  { %687 = vrot.lane.b32.xlu2 %v686_v6, %s778_s4 }
  0x1a   :  { %190 = vrot.lane.b32.xlu2 %v702_v12, %s778_s4 }
  0x64   :  { %v683_v31 = vpop.permute.xlu2 %682 }
  0x65   :  { %v684_v32 = vunpack.i.l.bf16 %v683_v31  ;;  %v685_v33 = vunpack.i.h.bf16 %v683_v31 }
  0x67   :  { %208 = vmatpush.msrb.mxu0 %v684_v32 }
  0x69   :  { %209 = vmatpush.msrb.mxu0 %v685_v33 }
  0x6c   :  { %v688_v34 = vpop.permute.xlu2 %687 }
  0x6d   :  { %v689_v35 = vunpack.i.l.bf16 %v688_v34  ;;  %v690_v36 = vunpack.i.h.bf16 %v688_v34  ;;  %v652_v34 = vld [vmem:[%s1054_s5 + $0x38] sm:$0xff] }
  0x6e   :  { %368 = vmatpush.msrb.mxu1 %v652_v34 }
  0x6f   :  { %210 = vmatpush.msrb.mxu0 %v689_v35  ;;  %v651_v35 = vld [vmem:[%s1054_s5 + $0x30] sm:$0xff] }
  0x70   :  { %369 = vmatpush.msrb.mxu1 %v651_v35 }
  0x71   :  { %211 = vmatpush.msrb.mxu0 %v690_v36  ;;  %v650_v36 = vld [vmem:[%s1054_s5 + $0x28] sm:$0xff] }
  0x72   :  { %370 = vmatpush.msrb.mxu1 %v650_v36 }
  0x74   :  { %v191_v38 = vpop.permute.xlu2 %190 }
  0x80   :  { %v66_v9 = vpop.f32.mrf.mxu0 }
  0x81   :  { %v69_v10 = vadd.f32 %v66_v9, %v42_v7 }
  0x83   :  { %v74_v11 = vadd.f32 %v701_v8, %v69_v10  ;;  %v929_v8 = vld [vmem:[%s1059_s10] sm:$0x1f] }
  0x84   :  { %v247_v10 = vperm.slane %v929_v8, 1 }
  0x85   :  { %642 = vmatmul.msk.f32.vlgmr.msra.gmra.mxu1 %vm84_vm1, %v74_v11 }
 0x102   :  { %v105_v13 = vpop.f32.mrf.mxu1 }
 0x103   :  { %v106_v14 = vadd.f32 %v702_v12, %v105_v13  ;;  %v249_v13 = vperm.slane %v929_v8, 2 }
 0x105   :  { %109 = vrot.lane.b32.xlu0 %v106_v14, %s776_s19 }
 0x177   :  { %v110_v15 = vpop.permute.xlu0 %109 }
 0x178   :  { %643 = vmatpush.xpose.msk.msra.mxu2 %vm84_vm1, %v110_v15 }
 0x17b   :  { %644 = vmatmul.msk.f32.vlgmr.msra.gmra.mxu2 %vm84_vm1, %v106_v14 }
 0x17c   :  { %274 = vmatpush.msrb.mxu2 %v254_v55 }
 0x17e   :  { %275 = vmatpush.msrb.mxu2 %v253_v56  ;;  %v704_v56 = vld [vmem:[%s1055_s6 + $0x1] ss:$0 sm:$0xff] }
 0x180   :  { %276 = vmatpush.msrb.mxu2 %v252_v57 }
 0x182   :  { %277 = vmatpush.msrb.mxu2 %v251_v58 }
 0x184   :  { %304 = vmatpush.msra.mxu2 %v290_v59 }
 0x186   :  { %305 = vmatpush.msra.mxu2 %v289_v60 }
 0x188   :  { %306 = vmatpush.msra.mxu2 %v288_v61 }
 0x18a   :  { %307 = vmatpush.msra.mxu2 %v287_v0 }
 0x18c   :  { %308 = vmatpush.msra.mxu2 %v286_v2 }
 0x1fe   :  { %v132_v16 = vpop.f32.mrf.mxu2 }
 0x1ff   :  { %v135_v18 = vmul.f32 0.17677669, %v132_v16  ;;  %v285_v16 = vld [vmem:[%s1058_s9 + $0x10] sm:$0xff] }
 0x200   :  { %309 = vmatpush.msra.mxu2 %v285_v16 }
 0x201   :  { %v136_v19 = vadd.f32 %v135_v18, %v882_v17  ;;  %v284_v18 = vld [vmem:[%s1058_s9 + $0x8] sm:$0xff] }
 0x202   :  { %310 = vmatpush.msra.mxu2 %v284_v18 }
 0x203   :  { %v137_v20 = vsel %vm45_vm0, %v136_v19, -inf }
 0x204   :  { %138 = vmax.xlane.f32.xlu0 %v137_v20  ;;  %v703_v20 = vld [vmem:[%s1057_s8] ss:$0 sm:$0xff] }
 0x277   :  { %v139_v21 = vpop.xlane.xlu0 %138 }
 0x278   :  { %v140_v22 = vsub.f32 %v136_v19, %v139_v21  ;;  %v283_v19 = vld [vmem:[%s1058_s9] sm:$0xff] }
 0x279   :  { %311 = vmatpush.msra.mxu2 %v283_v19 }
 0x27a   :  { %v141_v23 = vmul.f32 1.442695, %v140_v22 }
 0x27c   :  { %706 = vpow2.f32 %v141_v23 }
 0x282   :  { %v707_v24 = vpop.eup %706 }
 0x283   :  { %v143_v25 = vsel %vm45_vm0, %v707_v24, 0.0 }
 0x284   :  { %144 = vadd.xlane.f32.xlu1 %v143_v25 }
 0x29d   :  { %148 = vrot.lane.b32.xlu1 %v106_v14, %s777_s20 }
 0x2f7   :  { %v145_v27 = vpop.xlane.xlu1 %144 }
 0x2f8   :  { %708 = vrcp.f32 %v145_v27 }
 0x2f9   :  { %710 = vrcp.f32 %v779_v43 }
 0x2fe   :  { %v709_v28 = vpop.eup %708 }
 0x2ff   :  { %v147_v30 = vmul.f32 %v709_v28, %v707_v24  ;;  %v711_v44 = vpop.eup %710  ;;  %v291_v24 = vperm.slane %v929_v8, 0 }
 0x300   :  { %v222_v45 = vmul.f32 32.0, %v711_v44  ;;  %vm226_vm2 = vweird.f32 %v711_v44 }
 0x302   :  { %v223_v46 = vsub.f32 1.0, %v222_v45 }
 0x304   :  { %v224_v47 = vmul.f32 %v711_v44, %v223_v46 }
 0x306   :  { %v225_v48 = vadd.f32 %v711_v44, %v224_v47 }
 0x308   :  { %v894_v49 = vsel %vm226_vm2, %v711_v44, %v225_v48 }
 0x30f   :  { %v149_v29 = vpop.permute.xlu1 %148 }
 0x310   :  { %169 = vmatpush.msra.mxu3 %v149_v29 }
 0x311   :  { %645 = vmatmul.msk.f32.vlgmr.msra.gmra.mxu3 %vm45_vm0, %v147_v30 }
 0x394   :  { %v171_v37 = vpop.f32.mrf.mxu3 }
 0x395   :  { %646 = vmatmul.msk.f32.vlgmr.msrb.gmra.mxu0 %vm84_vm1, %v171_v37  ;;  %v649_v37 = vld [vmem:[%s1054_s5 + $0x20] sm:$0xff] }
 0x396   :  { %371 = vmatpush.msrb.mxu1 %v649_v37 }
 0x412   :  { %v213_v39 = vpop.f32.mrf.mxu0 }
 0x413   :  { %v214_v40 = vadd.f32 %v213_v39, %v191_v38  ;;  %v691_v38 = vpack.i.bf16 %v651_v35, %v652_v34  ;;  %v696_v39 = vpack.i.bf16 %v649_v37, %v650_v36  ;;  %v670_v35 = vld [vmem:[%s1058_s9 + $0x60] sm:$0xff]  ;;  %v669_v37 = vld [vmem:[%s1058_s9 + $0x58] sm:$0xff] }
 0x415   :  { %v217_v41 = vadd.f32 %v214_v40, %v74_v11 }
 0x417   :  { %v218_v42 = vsel %vm84_vm1, %v217_v41, 0.0 }
 0x418   :  { %219 = vadd.xlane.f32.xlu2 %v218_v42 }
 0x48b   :  { %v220_v50 = vpop.xlane.xlu2 %219 }
 0x48c   :  { %v228_v51 = vmul.f32 %v894_v49, %v220_v50  ;;  %v339_v50 = vperm.slane %v929_v8, 3 }
 0x48e   :  { %v229_v52 = vsub.f32 %v217_v41, %v228_v51 }
 0x490   :  { %v230_v53 = vmul.f32 %v229_v52, %v229_v52 }
 0x492   :  { %v231_v54 = vsel %vm84_vm1, %v230_v53, 0.0  ;;  %v341_v53 = vperm.slane %v929_v8, 4 }
 0x493   :  { %232 = vadd.xlane.f32.xlu1 %v231_v54 }
 0x506   :  { %v233_v62 = vpop.xlane.xlu1 %232 }
 0x507   :  { %v234_v63 = vmul.f32 %v233_v62, %v894_v49 }
 0x509   :  { %v235_v1 = vadd.f32 1e-05, %v234_v63 }
 0x50b   :  { %712 = vrsqrt.f32 %v235_v1  ;;  %vm242_vm4 = vweird.f32 %v235_v1 }
 0x511   :  { %v713_v3 = vpop.eup %712 }
 0x512   :  { %v237_v4 = vmul.f32 %v713_v3, %v235_v1  ;;  %vm243_vm3 = vweird.f32 %v713_v3 }
 0x513   :  { %vm244_vm5 = vmor %vm242_vm4, %vm243_vm3 }
 0x514   :  { %v238_v5 = vmul.f32 %v713_v3, %v237_v4 }
 0x516   :  { %v239_v6 = vmul.f32 0.5, %v238_v5 }
 0x518   :  { %v240_v7 = vsub.f32 1.5, %v239_v6 }
 0x51a   :  { %v241_v9 = vmul.f32 %v713_v3, %v240_v7 }
 0x51c   :  { %v245_v11 = vsel %vm244_vm5, %v713_v3, %v241_v9 }
 0x51d   :  { %v246_v12 = vmul.f32 %v245_v11, %v229_v52 }
 0x51f   :  { %v248_v14 = vmul.f32 %v247_v10, %v246_v12 }
 0x521   :  { %v250_v15 = vadd.f32 %v249_v13, %v248_v14 }
 0x523   :  { %647 = vmatmul.msk.f32.vlgmr.msrb.gmra.mxu2 %vm84_vm1, %v250_v15 }
 0x5a6   :  { %v279_v21 = vpop.f32.mrf.mxu2 }
 0x5a7   :  { %v280_v22 = vadd.f32 %v703_v20, %v279_v21 }
 0x5a9   :  { %v282_v23 = vmax.f32 %v280_v22, 0.0 }
 0x5ab   :  { %648 = vmatmul.msk.f32.vlgmr.msra.gmra.mxu2 %vm292_vm6, %v282_v23 }
 0x62e   :  { %v313_v25 = vpop.f32.mrf.mxu2 }
 0x62f   :  { %v314_v26 = vadd.f32 %v313_v25, %v291_v24 }
 0x631   :  { %v316_v27 = vadd.f32 %v314_v26, %v250_v15  ;;  %v663_v26 = vld [vmem:[%s1056_s7 + $0x38] sm:$0xff] }
 0x633   :  { %v317_v28 = vsel %vm84_vm1, %v316_v27, 0.0 }
 0x634   :  { %318 = vadd.xlane.f32.xlu0 %v317_v28  ;;  %v661_v28 = vld [vmem:[%s1056_s7 + $0x28] sm:$0xff] }
 0x6a7   :  { %v319_v29 = vpop.xlane.xlu0 %318 }
 0x6a8   :  { %v320_v30 = vmul.f32 %v319_v29, %v894_v49  ;;  %v660_v29 = vld [vmem:[%s1056_s7 + $0x20] sm:$0xff] }
 0x6aa   :  { %v321_v31 = vsub.f32 %v316_v27, %v320_v30  ;;  %v662_v27 = vld [vmem:[%s1056_s7 + $0x30] sm:$0xff]  ;;  %v673_v30 = vld [vmem:[%s1058_s9 + $0x78] sm:$0xff] }
 0x6ac   :  { %v322_v32 = vmul.f32 %v321_v31, %v321_v31 }
 0x6ae   :  { %v323_v33 = vsel %vm84_vm1, %v322_v32, 0.0  ;;  %v671_v32 = vld [vmem:[%s1058_s9 + $0x68] sm:$0xff] }
 0x6af   :  { %324 = vadd.xlane.f32.xlu0 %v323_v33 }
 0x722   :  { %v325_v40 = vpop.xlane.xlu0 %324 }
 0x723   :  { %v326_v41 = vmul.f32 %v325_v40, %v894_v49 }
 0x725   :  { %v327_v42 = vadd.f32 1e-05, %v326_v41 }
 0x727   :  { %714 = vrsqrt.f32 %v327_v42  ;;  %vm334_vm8 = vweird.f32 %v327_v42 }
 0x72d   :  { %v715_v43 = vpop.eup %714 }
 0x72e   :  { %v329_v44 = vmul.f32 %v715_v43, %v327_v42  ;;  %vm335_vm7 = vweird.f32 %v715_v43  ;;  %v1017_v42 = vld [vmem:[%s1059_s10 + $0x8] sm:$0x1f] }
 0x72f   :  { %vm336_vm9 = vmor %vm334_vm8, %vm335_vm7 }
 0x730   :  { %v330_v45 = vmul.f32 %v715_v43, %v329_v44 }
 0x732   :  { %v331_v46 = vmul.f32 0.5, %v330_v45  ;;  %v509_v45 = vperm.slane %v1017_v42, 1 }
 0x734   :  { %v332_v47 = vsub.f32 1.5, %v331_v46 }
 0x736   :  { %v333_v48 = vmul.f32 %v715_v43, %v332_v47 }
 0x738   :  { %v337_v51 = vsel %vm336_vm9, %v715_v43, %v333_v48  ;;  %v511_v48 = vperm.slane %v1017_v42, 2 }
 0x739   :  { %v338_v52 = vmul.f32 %v337_v51, %v321_v31  ;;  %v672_v31 = vld [vmem:[%s1058_s9 + $0x70] sm:$0xff] }
 0x73b   :  { %v340_v54 = vmul.f32 %v339_v50, %v338_v52  ;;  %v668_v52 = vld [vmem:[%s1058_s9 + $0x50] sm:$0xff] }
 0x73d   :  { %v342_v55 = vadd.f32 %v341_v53, %v340_v54  ;;  %v667_v53 = vld [vmem:[%s1058_s9 + $0x48] sm:$0xff]  ;;  %v666_v54 = vld [vmem:[%s1058_s9 + $0x40] sm:$0xff] }
 0x73f   :  { %654 = vmatmul.msk.f32.vlgmr.msrb.gmra.mxu1 %vm84_vm1, %v342_v55 }
 0x7bc   :  { %v373_v57 = vpop.f32.mrf.mxu1 }
 0x7bd   :  { %v374_v58 = vadd.f32 %v704_v56, %v373_v57 }
 0x7bf   :  { %416 = vrot.lane.b32.xlu1 %v374_v58, %s777_s20  ;;  %377 = vrot.lane.b32.xlu2 %v374_v58, %s776_s19 }
 0x7c7   :  { %697 = vrot.lane.b32.xlu2 %v696_v39, %s778_s4 }
 0x7cf   :  { %458 = vrot.lane.b32.xlu2 %v704_v56, %s778_s4 }
 0x819   :  { %v378_v59 = vpop.permute.xlu2 %377 }
 0x81a   :  { %655 = vmatpush.xpose.msk.msra.mxu0 %vm84_vm1, %v378_v59  ;;  %v556_v59 = vperm.slane %v1017_v42, 0 }
 0x81d   :  { %656 = vmatmul.msk.f32.vlgmr.msra.gmra.mxu0 %vm84_vm1, %v374_v58 }
 0x81e   :  { %538 = vmatpush.msrb.mxu0 %v663_v26 }
 0x820   :  { %539 = vmatpush.msrb.mxu0 %v662_v27 }
 0x821   :  { %v698_v9 = vpop.permute.xlu2 %697 }
 0x822   :  { %v699_v12 = vunpack.i.l.bf16 %v698_v9  ;;  %v700_v13 = vunpack.i.h.bf16 %v698_v9  ;;  %540 = vmatpush.msrb.mxu0 %v661_v28 }
 0x824   :  { %541 = vmatpush.msrb.mxu0 %v660_v29 }
 0x829   :  { %v459_v15 = vpop.permute.xlu2 %458 }
 0x831   :  { %v417_v60 = vpop.permute.xlu1 %416 }
 0x832   :  { %437 = vmatpush.msrb.mxu3 %v417_v60 }
 0x834   :  { %568 = vmatpush.msra.mxu3 %v673_v30 }
 0x836   :  { %569 = vmatpush.msra.mxu3 %v672_v31 }
 0x838   :  { %570 = vmatpush.msra.mxu3 %v671_v32 }
 0x83a   :  { %571 = vmatpush.msra.mxu3 %v670_v35 }
 0x83c   :  { %572 = vmatpush.msra.mxu3 %v669_v37 }
 0x83e   :  { %573 = vmatpush.msra.mxu3 %v668_v52 }
 0x840   :  { %574 = vmatpush.msra.mxu3 %v667_v53 }
 0x842   :  { %575 = vmatpush.msra.mxu3 %v666_v54 }
 0x89a   :  { %v400_v61 = vpop.f32.mrf.mxu0 }
 0x89b   :  { %v403_v62 = vmul.f32 0.17677669, %v400_v61 }
 0x89d   :  { %v404_v63 = vadd.f32 %v403_v62, %v882_v17 }
 0x89f   :  { %v405_v0 = vsel %vm45_vm0, %v404_v63, -inf }
 0x8a0   :  { %406 = vmax.xlane.f32.xlu0 %v405_v0 }
 0x913   :  { %v407_v1 = vpop.xlane.xlu0 %406 }
 0x914   :  { %v408_v2 = vsub.f32 %v404_v63, %v407_v1 }
 0x916   :  { %v409_v3 = vmul.f32 1.442695, %v408_v2 }
 0x918   :  { %716 = vpow2.f32 %v409_v3 }
 0x91e   :  { %v717_v4 = vpop.eup %716 }
 0x91f   :  { %v411_v5 = vsel %vm45_vm0, %v717_v4, 0.0 }
 0x920   :  { %412 = vadd.xlane.f32.xlu0 %v411_v5 }
 0x934   :  { %692 = vrot.lane.b32.xlu0 %v691_v38, %s778_s4  ;;  %s627_s4 = sshll.u32 %s1061_s12, 4  ;;  %s781_s12 = smov [#allocation2]   ;;  %s628_s4 = int_to_ptr.hbm [resolvable:$true] %s627_s4 }
 0x935   :  { %s614_s18 = sshll.u32 %s781_s12, 4  ;;  %s615_s18 = int_to_ptr.vmem [resolvable:$true] %s614_s18 }
 0x993   :  { %v413_v6 = vpop.xlane.xlu0 %412 }
 0x994   :  { %718 = vrcp.f32 %v413_v6 }
 0x99a   :  { %v719_v7 = vpop.eup %718 }
 0x99b   :  { %v415_v8 = vmul.f32 %v719_v7, %v717_v4 }
 0x99d   :  { %657 = vmatmul.msk.f32.vlgmr.msrb.gmra.mxu3 %vm45_vm0, %v415_v8  ;;  %608 = vst.msk [vmem:[#allocation4] sm:$0xff] %vm45_vm0, %v415_v8 }
 0x9a6   :  { %v693_v17 = vpop.permute.xlu0 %692 }
 0x9a7   :  { %v695_v10 = vunpack.i.h.bf16 %v693_v17  ;;  %v694_v11 = vunpack.i.l.bf16 %v693_v17 }
 0x9a9   :  { %476 = vmatpush.msra.mxu1 %v694_v11 }
 0x9ab   :  { %477 = vmatpush.msra.mxu1 %v695_v10 }
 0x9ad   :  { %478 = vmatpush.msra.mxu1 %v699_v12 }
 0x9af   :  { %479 = vmatpush.msra.mxu1 %v700_v13  ;;  %v603_v13 = vperm.slane %v1017_v42, 3 }
 0xa20   :  { %v439_v14 = vpop.f32.mrf.mxu3 }
 0xa21   :  { %658 = vmatmul.msk.f32.vlgmr.msra.gmra.mxu1 %vm84_vm1, %v439_v14 }
 0xa9e   :  { %v481_v16 = vpop.f32.mrf.mxu1 }
 0xa9f   :  { %v482_v18 = vadd.f32 %v481_v16, %v459_v15  ;;  %v605_v16 = vperm.slane %v1017_v42, 4 }
 0xaa1   :  { %v486_v19 = vadd.f32 %v482_v18, %v342_v55  ;;  %v705_v55 = vld [vmem:[%s1057_s8 + $0x1] ss:$0 sm:$0xff]  ;;  %s780_s8 = smov [#allocation4]  }
 0xaa2   :  { %s625_s9 = sshll.u32 %s780_s8, 4  ;;  %s626_s9 = int_to_ptr.vmem [resolvable:$true] %s625_s9 }
 0xaa3   :  { %v487_v20 = vsel %vm84_vm1, %v486_v19, 0.0  ;;  %630 = dma.vmem_to_hbm [thread:$0]  %s626_s9, 128, %s628_s4, [#allocation5]  }
 0xaa4   :  { %488 = vadd.xlane.f32.xlu1 %v487_v20 }
 0xb17   :  { %v489_v21 = vpop.xlane.xlu1 %488 }
 0xb18   :  { %v490_v22 = vmul.f32 %v489_v21, %v894_v49 }
 0xb1a   :  { %v491_v23 = vsub.f32 %v486_v19, %v490_v22 }
 0xb1c   :  { %v492_v24 = vmul.f32 %v491_v23, %v491_v23 }
 0xb1e   :  { %v493_v25 = vsel %vm84_vm1, %v492_v24, 0.0 }
 0xb1f   :  { %494 = vadd.xlane.f32.xlu0 %v493_v25 }
 0xb92   :  { %v495_v33 = vpop.xlane.xlu0 %494 }
 0xb93   :  { %v496_v34 = vmul.f32 %v495_v33, %v894_v49 }
 0xb95   :  { %v497_v36 = vadd.f32 1e-05, %v496_v34 }
 0xb97   :  { %720 = vrsqrt.f32 %v497_v36  ;;  %vm504_vm11 = vweird.f32 %v497_v36 }
 0xb9d   :  { %v721_v38 = vpop.eup %720 }
 0xb9e   :  { %v499_v39 = vmul.f32 %v721_v38, %v497_v36  ;;  %vm505_vm10 = vweird.f32 %v721_v38 }
 0xb9f   :  { %vm506_vm12 = vmor %vm504_vm11, %vm505_vm10 }
 0xba0   :  { %v500_v40 = vmul.f32 %v721_v38, %v499_v39 }
 0xba2   :  { %v501_v41 = vmul.f32 0.5, %v500_v40 }
 0xba4   :  { %v502_v43 = vsub.f32 1.5, %v501_v41 }
 0xba6   :  { %v503_v44 = vmul.f32 %v721_v38, %v502_v43 }
 0xba8   :  { %v507_v46 = vsel %vm506_vm12, %v721_v38, %v503_v44 }
 0xba9   :  { %v508_v47 = vmul.f32 %v507_v46, %v491_v23 }
 0xbab   :  { %v510_v50 = vmul.f32 %v509_v45, %v508_v47 }
 0xbad   :  { %v512_v51 = vadd.f32 %v511_v48, %v510_v50 }
 0xbaf   :  { %665 = vmatmul.msk.f32.vlgmr.msrb.gmra.mxu0 %vm84_vm1, %v512_v51 }
 0xc2c   :  { %v543_v56 = vpop.f32.mrf.mxu0 }
 0xc2d   :  { %v544_v57 = vadd.f32 %v705_v55, %v543_v56 }
 0xc2f   :  { %v546_v58 = vmax.f32 %v544_v57, 0.0 }
 0xc31   :  { %674 = vmatmul.msk.f32.vlgmr.msra.gmra.mxu3 %vm292_vm6, %v546_v58 }
 0xcb4   :  { %v577_v60 = vpop.f32.mrf.mxu3 }
 0xcb5   :  { %v578_v61 = vadd.f32 %v577_v60, %v556_v59 }
 0xcb7   :  { %v580_v62 = vadd.f32 %v578_v61, %v512_v51 }
 0xcb9   :  { %v581_v63 = vsel %vm84_vm1, %v580_v62, 0.0 }
 0xcba   :  { %582 = vadd.xlane.f32.xlu2 %v581_v63 }
 0xd2d   :  { %v583_v0 = vpop.xlane.xlu2 %582 }
 0xd2e   :  { %v584_v1 = vmul.f32 %v583_v0, %v894_v49 }
 0xd30   :  { %v585_v2 = vsub.f32 %v580_v62, %v584_v1 }
 0xd32   :  { %v586_v3 = vmul.f32 %v585_v2, %v585_v2 }
 0xd34   :  { %v587_v4 = vsel %vm84_vm1, %v586_v3, 0.0 }
 0xd35   :  { %588 = vadd.xlane.f32.xlu1 %v587_v4 }
 0xda8   :  { %v589_v5 = vpop.xlane.xlu1 %588 }
 0xda9   :  { %v590_v6 = vmul.f32 %v589_v5, %v894_v49 }
 0xdab   :  { %v591_v7 = vadd.f32 1e-05, %v590_v6 }
 0xdad   :  { %722 = vrsqrt.f32 %v591_v7  ;;  %vm598_vm14 = vweird.f32 %v591_v7 }
 0xdb3   :  { %v723_v8 = vpop.eup %722 }
 0xdb4   :  { %v593_v17 = vmul.f32 %v723_v8, %v591_v7  ;;  %vm599_vm13 = vweird.f32 %v723_v8 }
 0xdb5   :  { %vm600_vm15 = vmor %vm598_vm14, %vm599_vm13 }
 0xdb6   :  { %v594_v9 = vmul.f32 %v723_v8, %v593_v17 }
 0xdb8   :  { %v595_v10 = vmul.f32 0.5, %v594_v9 }
 0xdba   :  { %v596_v11 = vsub.f32 1.5, %v595_v10 }
 0xdbc   :  { %v597_v12 = vmul.f32 %v723_v8, %v596_v11 }
 0xdbe   :  { %v601_v14 = vsel %vm600_vm15, %v723_v8, %v597_v12 }
 0xdbf   :  { %v602_v15 = vmul.f32 %v601_v14, %v585_v2 }
 0xdc1   :  { %v604_v49 = vmul.f32 %v603_v13, %v602_v15 }
 0xdc3   :  { %v606_v18 = vadd.f32 %v605_v16, %v604_v49 }
 0xdc5   :  { %607 = vst.msk [vmem:[#allocation2] sm:$0xff] %vm84_vm1, %v606_v18 }
 0xdc6   :  { %619 = dma.vmem_to_hbm [thread:$0]  %s615_s18, 128, %s617_s21, [#allocation3]  }
 0xdc7   :  { %772 = dma.done.wait [#allocation3], 128  }
 0xdc8   :  { %773 = vsyncadd [#allocation3], 4294967168 }
 0xdc9   :  { %774 = dma.done.wait [#allocation5], 128  }
 0xdca   :  { %775 = vsyncadd [#allocation5], 4294967168 }
 0xdcb   :  { %639 = vsyncpa [#allocation3], 1 }
 0xdcc   :  { %640 = vsyncpa [#allocation5], 1 }

</bundles_post_ra>
